<compile_context>
chip_gen: v7x
topology: tpu7x:2x2x1
jax: 0.10.0
libtpu: 0.0.40
codegen_flags: <defaults>
</compile_context>

<pallas_src>
import jax
import jax.numpy as jnp
from jax import lax
from jax.experimental import pallas as pl
from jax.experimental.pallas import tpu as pltpu

NAATOKENS = 32  # module-level constant in the original repo


def _round_up(v, m):
    return (v + m - 1) // m * m


def _vmem_capacity_bytes():
    """Per-core VMEM capacity; conservative fallback if the query fails."""
    try:
        cap = getattr(pltpu.get_tpu_info(), "vmem_capacity_bytes", None)
        if cap:
            return int(cap)
    except Exception:
        pass
    return 64 * 1024 * 1024  # v7x per-TensorCore (smallest across v5e/v6e/v7x)


def _make_proj_kernel(b_blk):
    """Kernel for one (b_blk, tm, K) token tile -> (b_blk, NOUT, tm) logits tile."""

    def kernel(x_ref, w_ref, b_ref, o_ref):
        w = w_ref[...]       # (NOUT, K)  resident across the whole grid
        bcol = b_ref[...]    # (NOUT, 1)  broadcast over lanes in the add
        for bb in range(b_blk):  # small static unroll (b_blk <= 16)
            # W (NOUT,K) x x_tile (tm,K), contracting both last dims: the MXU's
            # native transposed-rhs path — no explicit transpose of the big
            # x tile, result (NOUT, tm) is lane-dense for the stores.
            acc = lax.dot_general(
                w, x_ref[bb],
                dimension_numbers=(((1,), (1,)), ((), ())),
                preferred_element_type=jnp.float32,
            )
            o_ref[bb] = (acc + bcol).astype(o_ref.dtype)

    return kernel


def masked_token_network_forward(x, weight, bias, *, tm=None, out_dtype=None):
    """x: (B, N, L, n_feat), weight: (NAATOKENS, n_feat), bias: (NAATOKENS,).

    Returns logits of shape (B, NAATOKENS, N*L), matching the PyTorch module.
    tm: optional token-tile override (multiple of 128).
    out_dtype: optional output dtype (default x.dtype); accumulation stays f32.
    """
    B, N, L, K = x.shape
    NOUT = weight.shape[0]
    NL = N * L
    out_dtype = jnp.dtype(x.dtype) if out_dtype is None else jnp.dtype(out_dtype)

    # Tiny params: cast to the activation dtype so the matmul sees one dtype.
    if weight.dtype != x.dtype:
        weight = weight.astype(x.dtype)

    in_isize = jnp.dtype(x.dtype).itemsize
    out_isize = out_dtype.itemsize

    # ---- VMEM-aware tile sizing (mem-bound: maximize bytes per grid step) ----
    K_pad = _round_up(K, 128)      # x tile lane dim pads to 128 in VMEM
    NOUT_pad = _round_up(NOUT, 8)  # out tile sublane dim pads to 8
    # Double-buffered (x in + out) VMEM bytes per token per batch row.
    bytes_per_token = 2 * (K_pad * in_isize + NOUT_pad * out_isize)

    vmem_cap = _vmem_capacity_bytes()
    budget = min(vmem_cap // 2, 48 * 1024 * 1024)

    if NL <= 128:
        tm_eff = NL  # block == full array dim is always legal
    else:
        tm_req = 16384 if tm is None else tm
        tm_cap = max(128, (budget // bytes_per_token) // 128 * 128)
        tm_eff = min(_round_up(NL, 128), _round_up(tm_req, 128), tm_cap)
        tm_eff = max(128, (tm_eff // 128) * 128)
    nl_tiles = pl.cdiv(NL, tm_eff)

    # Fold batch rows into the block when one tile already covers N*L: same
    # ~0.35 us per-step overhead, b_blk x the bytes per step.
    b_blk = 1
    if nl_tiles == 1 and B > 1:
        per_batch_bytes = max(1, tm_eff * bytes_per_token)
        target_step_bytes = 4 * 1024 * 1024
        b_blk = min(B, 16,
                    max(1, target_step_bytes // per_batch_bytes),
                    max(1, budget // per_batch_bytes))
        # Keep >= 2 grid steps so both v7x TensorCores get work.
        if b_blk > 1 and pl.cdiv(B, b_blk) * nl_tiles < 2:
            b_blk = pl.cdiv(B, 2)

    grid = (pl.cdiv(B, b_blk), nl_tiles)

    # Actual double-buffered footprint -> explicit scoped-VMEM limit.
    x_tile_b = b_blk * _round_up(tm_eff, 8) * K_pad * in_isize
    o_tile_b = b_blk * NOUT_pad * _round_up(tm_eff, 128) * out_isize
    w_tile_b = NOUT_pad * K_pad * in_isize
    bias_tile_b = NOUT_pad * 128 * jnp.dtype(bias.dtype).itemsize
    footprint = 2 * (x_tile_b + o_tile_b + w_tile_b + bias_tile_b)
    vmem_limit = int(min(int(vmem_cap * 0.9),
                         max(footprint + (4 << 20), 32 << 20)))

    x3 = x.reshape(B, NL, K)       # channels-last token view (no copy)
    b2 = bias.reshape(NOUT, 1)

    flops = 2 * B * NL * K * NOUT
    bytes_accessed = (in_isize * (B * NL * K + NOUT * K)
                      + jnp.dtype(bias.dtype).itemsize * NOUT
                      + out_isize * B * NOUT * NL)

    out = pl.pallas_call(
        _make_proj_kernel(b_blk),
        out_shape=jax.ShapeDtypeStruct((B, NOUT, NL), out_dtype),
        grid_spec=pltpu.PrefetchScalarGridSpec(
            num_scalar_prefetch=0,
            grid=grid,
            in_specs=[
                pl.BlockSpec((b_blk, tm_eff, K), lambda bi, ti: (bi, ti, 0)),
                pl.BlockSpec((NOUT, K), lambda bi, ti: (0, 0)),
                pl.BlockSpec((NOUT, 1), lambda bi, ti: (0, 0)),
            ],
            out_specs=pl.BlockSpec((b_blk, NOUT, tm_eff),
                                   lambda bi, ti: (bi, 0, ti)),
        ),
        compiler_params=pltpu.CompilerParams(
            dimension_semantics=("parallel", "parallel"),
            vmem_limit_bytes=vmem_limit,
        ),
        cost_estimate=pl.CostEstimate(
            flops=flops, transcendentals=0, bytes_accessed=bytes_accessed),
    )(x3, weight, b2)
    return out


def _reference(x, weight, bias):
    B, N, L, _ = x.shape
    NOUT = weight.shape[0]
    logits = jnp.einsum("bnlk,ok->bnlo", x, weight) + bias
    return jnp.transpose(logits, (0, 3, 1, 2)).reshape(B, NOUT, N * L)


if __name__ == "__main__":
    key = jax.random.PRNGKey(0)

    def run_case(B, N, L, n_feat, tm=None):
        kx, kw, kb = jax.random.split(
            jax.random.fold_in(key, B * 1000 + N * 10 + L), 3)
        x = jax.random.normal(kx, (B, N, L, n_feat), dtype=jnp.float32)
        # reset_parameter() zeros the params in the original module; use small
        # random values here so the correctness check is non-trivial.
        weight = 0.02 * jax.random.normal(kw, (NAATOKENS, n_feat), dtype=jnp.float32)
        bias = 0.01 * jax.random.normal(kb, (NAATOKENS,), dtype=jnp.float32)

        out = jax.block_until_ready(
            masked_token_network_forward(x, weight, bias, tm=tm))
        ref = _reference(x, weight, bias)
        assert out.shape == (B, NAATOKENS, N * L), out.shape
        assert jnp.allclose(out, ref, atol=1e-5, rtol=1e-5), "mismatch vs reference"

    # Main small case consistent with the module: B=2, N=8, L=16, n_feat=32.
    run_case(2, 8, 16, 32)
    # Batch folded into the block (b_blk > 1 -> static in-kernel unroll).
    run_case(8, 4, 32, 32)
    # Ragged batch tail (B=3, b_blk=2 -> last batch-block pad-read/mask-written).
    run_case(3, 4, 32, 32)
    # Ragged N*L tail: NL=192 with tm=128 -> last token block masked.
    run_case(2, 8, 24, 32, tm=128)

    print("KERNEL_OK")
</pallas_src>

<mosaic_0001>
module attributes {stable_mosaic.version = 11 : i64} {
  func.func @kernel(%arg0: i32, %arg1: i32, %arg2: memref<1x128x32xf32, #tpu.memory_space<vmem>>, %arg3: memref<32x32xf32, #tpu.memory_space<vmem>>, %arg4: memref<32x1xf32, #tpu.memory_space<vmem>>, %arg5: memref<1x32x128xf32, #tpu.memory_space<vmem>>) attributes {dimension_semantics = [#tpu.dimension_semantics<parallel>, #tpu.dimension_semantics<parallel>], iteration_bounds = array<i64: 2, 1>, scalar_prefetch = 0 : i64, scratch_operands = 0 : i64, tpu.core_type = #tpu.core_type<tc>, window_params = [{transform_indices = @transform_0, window_bounds = array<i64: 1, 128, 32>}, {pipeline_mode = #tpu.pipeline_mode<synchronous>, transform_indices = @transform_1, window_bounds = array<i64: 32, 32>}, {pipeline_mode = #tpu.pipeline_mode<synchronous>, transform_indices = @transform_2, window_bounds = array<i64: 32, 1>}, {transform_indices = @transform_3, window_bounds = array<i64: 1, 32, 128>}]} {
    %c0 = arith.constant 0 : index
    %c0_0 = arith.constant 0 : index
    %0 = vector.load %arg3[%c0, %c0_0] : memref<32x32xf32, #tpu.memory_space<vmem>>, vector<32x32xf32>
    %c0_1 = arith.constant 0 : index
    %c0_2 = arith.constant 0 : index
    %1 = vector.load %arg4[%c0_1, %c0_2] : memref<32x1xf32, #tpu.memory_space<vmem>>, vector<32x1xf32>
    %c0_3 = arith.constant 0 : index
    %c0_4 = arith.constant 0 : index
    %c0_5 = arith.constant 0 : index
    %2 = vector.load %arg2[%c0_3, %c0_4, %c0_5] : memref<1x128x32xf32, #tpu.memory_space<vmem>>, vector<1x128x32xf32>
    %3 = vector.shape_cast %2 : vector<1x128x32xf32> to vector<128x32xf32>
    %cst = arith.constant dense<0.000000e+00> : vector<32x128xf32>
    %4 = tpu.matmul %0, %3, %cst {dimension_numbers = #tpu.dot_dimension_numbers<[1], [1], [0], [0], [0, 0, 1, 0], [], []>} : vector<32x32xf32>, vector<128x32xf32>, vector<32x128xf32> -> vector<32x128xf32>
    %5 = vector.broadcast %1 : vector<32x1xf32> to vector<32x128xf32>
    %6 = arith.addf %4, %5 : vector<32x128xf32>
    %c0_6 = arith.constant 0 : index
    %c0_7 = arith.constant 0 : index
    %c0_8 = arith.constant 0 : index
    %7 = vector.load %arg5[%c0_6, %c0_7, %c0_8] : memref<1x32x128xf32, #tpu.memory_space<vmem>>, vector<1x32x128xf32>
    %8 = vector.shape_cast %7 : vector<1x32x128xf32> to vector<32x128xf32>
    %9 = vector.shape_cast %6 : vector<32x128xf32> to vector<1x32x128xf32>
    tpu.vector_store %arg5[%c0_6, %c0_7, %c0_8], %9 {strides = array<i32>} : memref<1x32x128xf32, #tpu.memory_space<vmem>>, vector<1x32x128xf32>,
    return
  }
  func.func @transform_0(%arg0: i32, %arg1: i32) -> (i32, i32, i32) {
    %c0_i32 = arith.constant 0 : i32
    %c0_i32_0 = arith.constant 0 : i32
    return %arg0, %arg1, %c0_i32 : i32, i32, i32
  }
  func.func @transform_1(%arg0: i32, %arg1: i32) -> (i32, i32) {
    %c0_i32 = arith.constant 0 : i32
    %c0_i32_0 = arith.constant 0 : i32
    %c0_i32_1 = arith.constant 0 : i32
    return %c0_i32, %c0_i32_0 : i32, i32
  }
  func.func @transform_2(%arg0: i32, %arg1: i32) -> (i32, i32) {
    %c0_i32 = arith.constant 0 : i32
    %c0_i32_0 = arith.constant 0 : i32
    %c0_i32_1 = arith.constant 0 : i32
    return %c0_i32, %c0_i32_0 : i32, i32
  }
  func.func @transform_3(%arg0: i32, %arg1: i32) -> (i32, i32, i32) {
    %c0_i32 = arith.constant 0 : i32
    %c0_i32_0 = arith.constant 0 : i32
    return %arg0, %c0_i32, %arg1 : i32, i32, i32
  }
}

</mosaic_0001>

<bundles_post_ra>
// kernel: tpu_custom_call.1
= control target key start
LH: loop header
LB: loop body
LE: loop exit
PB: predicated region body
PF: predicated region fallthrough
CT: control target
= control target key end

     0   :  { %8 = vsyncpa [#allocation3], 0  ;;  %s1038_s0 = inlined_call_operand.vmem [shape: f32[2,128,32], index: 0, kind: input, shape index: {}]   ;;  %s1039_s1 = inlined_call_operand.vmem [shape: f32[32,32], index: 1, kind: input, shape index: {}]   ;;  %s1040_s2 = inlined_call_operand.vmem [shape: f32[32,1], index: 2, kind: input, shape index: {}]   ;;  %s1041_s3 = inlined_call_operand.hbm [shape: f32[2,32,128], index: 3, kind: output, shape index: {}]  }
   0x1   :  { %10 = vsyncpa [#allocation3 + $0x1], 0  ;;  %s807_s12 = smov 0   ;;  %s809_s13 = smov 0  }
   0x2   :  { %s811_s14 = smov 0   ;;  %s813_s15 = smov 0  }
   0x3   :  { %s815_s16 = smov 0   ;;  %s817_s17 = smov 0  }
   0x4 LB: > { %s486_s18 = sadd.s32 4294967295, %s781_s17   ;;  %s487_s19 = sadd.s32 4294967294, %s781_s17   ;;  %s781_s17 = sphi %s817_s17, %s16_s17   ;;  %s777_s16 = sphi %s815_s16, %s1050_s16   ;;  %s773_s15 = sphi %s813_s15, %s1049_s15   ;;  %s769_s14 = sphi %s811_s14, %s1048_s14   ;;  %s765_s13 = sphi %s809_s13, %s1047_s13   ;;  %s761_s12 = sphi %s807_s12, %s1046_s12  }
   0x5   : > { %s28_s20 = sadd.s32 1, %s777_s16  ;;  %s107_s21 = sadd.s32 1, %s769_s14 }
   0x6   : > { %p30_p0 = scmp.ge.s32.totalorder %s28_s20, 2  ;;  %p117_p1 = scmp.ne.s32.totalorder %s769_s14, %s765_s13 }
   0x7   : > { %p118_p2 = scmp.eq.s32.totalorder %s486_s18, 1  ;;  %p123_p3 = scmp.ne.s32.totalorder %s765_s13, %s761_s12 }
   0x8   : > { %s1052_s20 = smov (%p30_p0, %s28_s20), 0  ;;  %p124_p5 = scmp.eq.s32.totalorder %s487_s19, 1 }
   0x9   : > { %p847_p4 = por %p118_p2, %p117_p1  ;;  %s102_s23 = ssub.s32 %s777_s16, %s1052_s20 }
   0xa   : > { %p490_p6 = scmp.ge.s32.totalorder %s781_s17, 1  ;;  %p105_p7 = scmp.eq.s32.totalorder %s102_s23, 0 }
   0xb   : > { %p854_p8 = por %p124_p5, %p123_p3  ;;  %p161_p9 = scmp.lt.s32.totalorder %s781_s17, 3 }
   0xc   : > { %s860_s25 = scalar_select %p105_p7, %s769_s14, %s107_s21  }
   0xd   : > { %p162_p10 = pnand %p490_p6, %p161_p9 }
   0xe   : > { %p190_p11 = scmp.lt.s32.totalorder (!%p162_p10), %s773_s15, 1  ;;  %vm243_vm0 = vcmask (!%p162_p10), 261120   ;;  %v199_v0 = vld [vmem:[%s1039_s1] sm:$0xff] (!%p162_p10)  ;;  %v201_v1 = vld [vmem:[%s1039_s1 + $0x10] sm:$0xff] (!%p162_p10)  ;;  %v783_v3 = vmov (!%p162_p10), 0   ;;  %v206_v5 = vld [vmem:[%s1040_s2 + $0x18] sm:$0xff] (!%p162_p10) }
   0xf   : > { %165 = sbr.rel (%p162_p10) target bundleno = 323 (0x143), region = 32  ;;  %573 = vmatprep.mubr.msk.f32.mxu0 (!%p162_p10), %vm243_vm0, %v199_v0  ;;  %576 = vmatprep.mubr.msk.f32.mxu1 (!%p162_p10), %vm243_vm0, %v201_v1  ;;  %v205_v2 = vld [vmem:[%s1040_s2 + $0x10] sm:$0xff] (!%p162_p10)  ;;  %v203_v4 = vld [vmem:[%s1040_s2] sm:$0xff] (!%p162_p10)  ;;  %v204_v6 = vld [vmem:[%s1040_s2 + $0x8] sm:$0xff] (!%p162_p10)  ;;  %s186_s30 = sand.u32 (!%p162_p10), 1, %s765_s13  }
  0x10   : > { %702 = vset.pattern.permute.xlu1 (!%p162_p10), %v783_v3  ;;  %701 = vset.pattern.permute.xlu0 (!%p162_p10), %v783_v3  ;;  %vm891_vm1 = vmpackc.low (!%p162_p10), %vm243_vm0, %vm243_vm0  ;;  %v200_v32 = vld [vmem:[%s1039_s1 + $0x8] sm:$0xff] (!%p162_p10)  ;;  %v202_v33 = vld [vmem:[%s1039_s1 + $0x18] sm:$0xff] (!%p162_p10)  ;;  %s491_s4 = sshll.u32 (!%p162_p10), %s186_s30, 5  ;;  %s520_s7 = sshll.u32 (!%p162_p10), %s773_s15, 9 }
  0x11   : > { %235 = vperm.xlu1 (!%p162_p10), %702, %v205_v2   ;;  %225 = vperm.xlu0 (!%p162_p10), %701, %v203_v4   ;;  %s990_s10 = scalar_lea.hbm (!%p162_p10), %s1041_s3, %s520_s7  ;;  %s784_s18 = smov (!%p162_p10), [#allocation2]  }
  0x12   : > { %s707_s19 = sshll.u32 (!%p162_p10), %s784_s18, 4  ;;  %s708_s19 = int_to_ptr.vmem [resolvable:$false] %s707_s19 }
  0x13   : > { %s709_s21 = scalar_lea.vmem (!%p162_p10), %s708_s19, 1024 }
  0x15   : > { %240 = vperm.xlu1 (!%p162_p10), %702, %v206_v5   ;;  %230 = vperm.xlu0 (!%p162_p10), %701, %v204_v6  }
  0x16   : > { %s191_s5 = scalar_select %p190_p11, %s773_s15, 1 }
  0x17   : > { %s992_s15 = scalar_lea.sflag [#allocation3], %s186_s30 }
  0x18   : > { %s519_s8 = sshll.u32 %s191_s5, 7  ;;  %s188_s5 = scalar_lea.vmem [#allocation2], %s491_s4 }
  0x19   : > { %s887_s23 = scalar_lea.vmem %s1038_s0, %s519_s8  ;;  %s408_s6 = sshll.u32 %s188_s5, 4  ;;  %s985_s6 = int_to_ptr.vmem [resolvable:$true] %s408_s6 }
  0x1a   : > { %v207_v8 = vld [vmem:[%s887_s23] sm:$0xff]  ;;  %v208_v9 = vld [vmem:[%s887_s23 + $0x8] sm:$0xff]  ;;  %v209_v10 = vld [vmem:[%s887_s23 + $0x10] sm:$0xff]  ;;  %s703_s11 = scalar_lea.vmem %s985_s6, 512  ;;  %p710_p1 = scmp.lt.s32.totalorder %s985_s6, %s708_s19 }
  0x1b   : > { %v579_v11 = vpack.c.bf16 %v208_v9, %v207_v8  ;;  %v210_v12 = vld [vmem:[%s887_s23 + $0x18] sm:$0xff]  ;;  %v211_v14 = vld [vmem:[%s887_s23 + $0x20] sm:$0xff]  ;;  %v212_v15 = vld [vmem:[%s887_s23 + $0x28] sm:$0xff]  ;;  %p704_p12 = scmp.ne.s32.totalorder %s985_s6, %s703_s11  ;;  %p711_p2 = scmp.lt.s32.totalorder %s709_s21, %s703_s11 }
  0x1c   : > { %v585_v13 = vpack.c.bf16 %v210_v12, %v209_v10  ;;  %v591_v16 = vpack.c.bf16 %v212_v15, %v211_v14  ;;  %v213_v17 = vld [vmem:[%s887_s23 + $0x30] sm:$0xff]  ;;  %v214_v18 = vld [vmem:[%s887_s23 + $0x38] sm:$0xff]  ;;  %v215_v20 = vld [vmem:[%s887_s23 + $0x40] sm:$0xff] }
  0x1d   : > { %581 = vmatprep.subr.msk.bf16.mxu0 %vm891_vm1, %v579_v11  ;;  %627 = vmatprep.subr.msk.bf16.mxu1 %vm891_vm1, %v579_v11  ;;  %v597_v19 = vpack.c.bf16 %v214_v18, %v213_v17  ;;  %v216_v21 = vld [vmem:[%s887_s23 + $0x48] sm:$0xff]  ;;  %v217_v23 = vld [vmem:[%s887_s23 + $0x50] sm:$0xff]  ;;  %v218_v24 = vld [vmem:[%s887_s23 + $0x58] sm:$0xff]  ;;  %p705_p13 = pnand %p704_p12, %p847_p4  ;;  %p712_p3 = por %p711_p2, %p710_p1 }
  0x1e   : > { %584 = vmatpush3.bf16.xpose.msk.msra.mxu0 %vm891_vm1, %v579_v11  ;;  %635 = vmatpush3.bf16.xpose.msk.msra.mxu1 %vm891_vm1, %v579_v11  ;;  %v603_v22 = vpack.c.bf16 %v216_v21, %v215_v20  ;;  %v609_v25 = vpack.c.bf16 %v218_v24, %v217_v23  ;;  %v219_v26 = vld [vmem:[%s887_s23 + $0x60] sm:$0xff]  ;;  %v220_v27 = vld [vmem:[%s887_s23 + $0x68] sm:$0xff]  ;;  %v221_v29 = vld [vmem:[%s887_s23 + $0x70] sm:$0xff] }
  0x1f   : > { %587 = vmatprep.subr.msk.bf16.mxu0 %vm891_vm1, %v585_v13  ;;  %628 = vmatprep.subr.msk.bf16.mxu1 %vm891_vm1, %v585_v13  ;;  %v615_v28 = vpack.c.bf16 %v220_v27, %v219_v26  ;;  %v222_v30 = vld [vmem:[%s887_s23 + $0x78] sm:$0xff]  ;;  %p706_p0 = pneg %p705_p13 }
  0x20   : > { %v621_v31 = vpack.c.bf16 %v222_v30, %v221_v29 }
  0x21   : > { %p713_p5 = pnand %p712_p3, %p706_p0 }
  0x26   : > { %590 = vmatpush3.bf16.xpose.msk.msra.mxu0 %vm891_vm1, %v585_v13  ;;  %636 = vmatpush3.bf16.xpose.msk.msra.mxu1 %vm891_vm1, %v585_v13 }
  0x27   : > { %593 = vmatprep.subr.msk.bf16.mxu0 %vm891_vm1, %v591_v16  ;;  %629 = vmatprep.subr.msk.bf16.mxu1 %vm891_vm1, %v591_v16 }
  0x2e   : > { %596 = vmatpush3.bf16.xpose.msk.msra.mxu0 %vm891_vm1, %v591_v16  ;;  %637 = vmatpush3.bf16.xpose.msk.msra.mxu1 %vm891_vm1, %v591_v16 }
  0x2f   : > { %599 = vmatprep.subr.msk.bf16.mxu0 %vm891_vm1, %v597_v19  ;;  %630 = vmatprep.subr.msk.bf16.mxu1 %vm891_vm1, %v597_v19 }
  0x36   : > { %602 = vmatpush3.bf16.xpose.msk.msra.mxu0 %vm891_vm1, %v597_v19  ;;  %638 = vmatpush3.bf16.xpose.msk.msra.mxu1 %vm891_vm1, %v597_v19 }
  0x37   : > { %605 = vmatprep.subr.msk.bf16.mxu0 %vm891_vm1, %v603_v22  ;;  %631 = vmatprep.subr.msk.bf16.mxu1 %vm891_vm1, %v603_v22 }
  0x3e   : > { %608 = vmatpush3.bf16.xpose.msk.msra.mxu0 %vm891_vm1, %v603_v22  ;;  %639 = vmatpush3.bf16.xpose.msk.msra.mxu1 %vm891_vm1, %v603_v22 }
  0x3f   : > { %611 = vmatprep.subr.msk.bf16.mxu0 %vm891_vm1, %v609_v25  ;;  %632 = vmatprep.subr.msk.bf16.mxu1 %vm891_vm1, %v609_v25 }
  0x46   : > { %614 = vmatpush3.bf16.xpose.msk.msra.mxu0 %vm891_vm1, %v609_v25  ;;  %640 = vmatpush3.bf16.xpose.msk.msra.mxu1 %vm891_vm1, %v609_v25 }
  0x47   : > { %617 = vmatprep.subr.msk.bf16.mxu0 %vm891_vm1, %v615_v28  ;;  %633 = vmatprep.subr.msk.bf16.mxu1 %vm891_vm1, %v615_v28 }
  0x4e   : > { %620 = vmatpush3.bf16.xpose.msk.msra.mxu0 %vm891_vm1, %v615_v28  ;;  %641 = vmatpush3.bf16.xpose.msk.msra.mxu1 %vm891_vm1, %v615_v28 }
  0x4f   : > { %623 = vmatprep.subr.msk.bf16.mxu0 %vm891_vm1, %v621_v31  ;;  %634 = vmatprep.subr.msk.bf16.mxu1 %vm891_vm1, %v621_v31 }
  0x56   : > { %626 = vmatpush3.bf16.xpose.msk.msra.mxu0 %vm891_vm1, %v621_v31  ;;  %642 = vmatpush3.bf16.xpose.msk.msra.mxu1 %vm891_vm1, %v621_v31 }
  0x5d   : > { %574 = vmatmul.mubr.msk.f32.vlgmr.msra.gmra.mrb[0].mxu0 %vm243_vm0, %v200_v32  ;;  %577 = vmatmul.mubr.msk.f32.vlgmr.msra.gmra.mrb[0].mxu1 %vm243_vm0, %v202_v33 }
  0x90   : > { %v236_v34 = vpop.permute.xlu1 %235  ;;  %v226_v35 = vpop.permute.xlu0 %225 }
  0x94   : > { %v241_v36 = vpop.permute.xlu1 %240  ;;  %v231_v37 = vpop.permute.xlu0 %230 }
 0x130   : > { %v575_v38 = vpop.f32.mrb[0].mxu0  ;;  %v578_v39 = vpop.f32.mrb[0].mxu1 }
 0x131   : > { %v376_v40 = vadd.f32 %v575_v38, %v231_v37  ;;  %v386_v41 = vadd.f32 %v578_v39, %v241_v36  ;;  %v370_v42 = vpop.f32.mrb[1].mxu0  ;;  %v380_v43 = vpop.f32.mrb[1].mxu1 }
 0x132   : > { %v371_v44 = vadd.f32 %v370_v42, %v226_v35  ;;  %v381_v45 = vadd.f32 %v380_v43, %v236_v34 }
 0x133   : > { %390 = vst [vmem:[%s188_s5 + $0x8] sm:$0xff] %v376_v40  ;;  %392 = vst [vmem:[%s188_s5 + $0x18] sm:$0xff] %v386_v41 }
 0x134   : > { %389 = vst [vmem:[%s188_s5] sm:$0xff] %v371_v44  ;;  %391 = vst [vmem:[%s188_s5 + $0x10] sm:$0xff] %v381_v45 }
 0x135   : > { %716 = shalt.err (!%p713_p5)
}
 0x136   : > { %s717_s23 = scalar_lea.hbm %s990_s10, 512  ;;  %s721_s28 = scalar_lea.hbm %s1041_s3, 1024 }
 0x137   : > { %p718_p6 = scmp.ne.s32.totalorder %s990_s10, %s717_s23  ;;  %p722_p10 = scmp.lt.u32.totalorder %s990_s10, %s1041_s3 }
 0x138   : > { %p723_p11 = scmp.lt.u32.totalorder %s721_s28, %s717_s23  ;;  %p725_p13 = scmp.lt.u32.totalorder %s717_s23, %s990_s10 }
 0x139   : > { %p719_p7 = pnand %p718_p6, %p847_p4 }
 0x13a   : > { %p724_p12 = por %p723_p11, %p722_p10 }
 0x13b   : > { %p720_p9 = pneg %p719_p7 }
 0x13c   : > { %p726_p0 = por %p725_p13, %p724_p12 }
 0x13e   : > { %p727_p1 = pnand %p726_p0, %p720_p9 }
 0x140   : > { %730 = shalt.err (!%p727_p1)
}
 0x141   : > { %s785_s4 = smov 128   ;;  %s786_s5 = smov 8  }
 0x142   : > { %643 = dma.vmem_to_hbm [thread:$0]  (%p847_p4), %s985_s6, 512, %s990_s10, %s992_s15, %s785_s4, %s785_s4, %s786_s5  }
 0x143 PF: > { %p649_p2 = scmp.ge.s32.totalorder %s781_s17, 2  ;;  %s423_s7 = sand.u32 1, %s761_s12  }
 0x144   : > { %s424_s8 = scalar_lea.sflag [#allocation3], %s423_s7 }
 0x145   : > { %p646_p3 = pnand %p649_p2, %p854_p8 }
 0x147   : > { %756 = dma.done.wait (!%p646_p3), %s424_s8, 512  }
 0x148   : > { %758 = vsyncadd (!%p646_p3), %s424_s8, 4294966784  ;;  %s16_s17 = sadd.s32 1, %s781_s17   ;;  %s1046_s12 = smov %s765_s13 }
 0x149   : > { %p13_p5 = scmp.ge.s32.totalorder %s16_s17, 4   ;;  %s1047_s13 = smov %s769_s14 }
 0x14a   : > { %s1048_s14 = smov %s860_s25  ;;  %s1049_s15 = smov %s777_s16 }
 0x14b   : > { %s1050_s16 = smov %s1052_s20  ;;  %15 = sbr.rel (!%p13_p5) target bundleno = 4 (0x4), region = 67 }
 0x152   :  { %429 = vsyncpa [#allocation3], 1 }
 0x153   :  { %431 = vsyncpa [#allocation3 + $0x1], 1 }

</bundles_post_ra>
